<compile_context>
chip_gen: v5e
topology: v5e:2x2
jax: 0.10.0
libtpu: 0.0.40
codegen_flags: <defaults>
</compile_context>

<pallas_src>
import jax
import jax.numpy as jnp
from jax import lax
from jax.experimental import pallas as pl
from jax.experimental.pallas import tpu as pltpu

CONTEXT_SIZE = 2
N_DIM = 100
HIDDEN = 128

EMB_PAD = 128        # per-word embedding dim padded 100 -> 128 (lane aligned)
VOCAB_PAD = 128      # vocab padded to lane-dense output width
EMB_ROWS_PAD = 128   # embedding-table rows padded (vocab ~97 -> 128)
TILE_M = 128         # batch rows per grid step (MXU height)

sentence = ("\nWhen forty winters shall besiege thy brow,\nAnd dig deep trenches in thy "
            "beauty\\'s field,\nThy youth\\'s proud livery so gazed on now,\nWill be a "
            "totter\\'d weed of small worth held:\nThen being asked, where all thy beauty "
            "lies,\nWhere all the treasure of thy lusty days;\nTo say, within thine own deep "
            "sunken eyes,\nWere an all-eating shame, and thriftless praise.\nHow much more "
            "praise deserv\\'d thy beauty\\'s use,\nIf thou couldst answer \\'This fair child "
            "of mine\nShall sum my count, and make my old excuse,\\'\nProving his beauty by "
            "succession thine!\nThis were to be new made when thou art old,\nAnd see thy "
            "blood warm when thou feel\\'st it cold.\n").split()

vocb = sorted(set(sentence))            # deterministic ordering (python set order is not)
word_to_idx = {w: i for i, w in enumerate(vocb)}
VOCAB = len(word_to_idx)                # ~97


def ngram_kernel(idx_ref,                                  # SMEM (scalar prefetch): flat indices
                 emb_ref, w1a_ref, w1b_ref, b1_ref, w2_ref, b2_ref,   # VMEM inputs
                 out_ref,                                  # VMEM output (TILE_M, VOCAB_PAD)
                 x0_ref, x1_ref):                          # VMEM scratch (TILE_M, EMB_PAD) x2
    tile = pl.program_id(0)

    # --- fused embedding gather: one row per (batch row, context position) ---
    def gather_row(i, carry):
        r = tile * TILE_M + i
        i0 = idx_ref[r * CONTEXT_SIZE]
        i1 = idx_ref[r * CONTEXT_SIZE + 1]
        x0_ref[pl.ds(i, 1), :] = emb_ref[pl.ds(i0, 1), :]
        x1_ref[pl.ds(i, 1), :] = emb_ref[pl.ds(i1, 1), :]
        return carry

    lax.fori_loop(0, TILE_M, gather_row, 0)

    # --- linear1 (K = 200 split as two 128-wide matmuls) + relu ---
    h = jnp.dot(x0_ref[...], w1a_ref[...], preferred_element_type=jnp.float32)
    h = h + jnp.dot(x1_ref[...], w1b_ref[...], preferred_element_type=jnp.float32)
    h = jnp.maximum(h + b1_ref[...], 0.0)                  # (TILE_M, HIDDEN)

    # --- linear2 (padded vocab lanes carry bias -1e30 -> exp()==0) ---
    logits = jnp.dot(h, w2_ref[...], preferred_element_type=jnp.float32) + b2_ref[...]

    # --- log_softmax along the (lane-dense, 128-wide) vocab axis ---
    m = jnp.max(logits, axis=-1, keepdims=True)
    shifted = logits - m
    lse = jnp.log(jnp.sum(jnp.exp(shifted), axis=-1, keepdims=True))
    out_ref[...] = shifted - lse


def ngram_forward(x_idx, padded_params):
    """x_idx: (N, CONTEXT_SIZE) int32 context indices -> (N, VOCAB) log-probs."""
    emb_pad, w1a, w1b, b1, w2, b2p = padded_params
    n = x_idx.shape[0]
    n_tiles = (n + TILE_M - 1) // TILE_M
    n_pad = n_tiles * TILE_M

    idx = jnp.zeros((n_pad, CONTEXT_SIZE), jnp.int32).at[:n].set(x_idx.astype(jnp.int32))
    idx_flat = idx.reshape(-1)                             # 1-D SMEM layout (small padding)

    cost = pl.CostEstimate(
        flops=2 * n_pad * (2 * EMB_PAD * HIDDEN + HIDDEN * VOCAB_PAD),
        transcendentals=n_pad * (VOCAB_PAD + 1),
        bytes_accessed=4 * (idx_flat.size + emb_pad.size + w1a.size + w1b.size
                            + b1.size + w2.size + b2p.size + n_pad * VOCAB_PAD),
    )

    out = pl.pallas_call(
        ngram_kernel,
        out_shape=jax.ShapeDtypeStruct((n_pad, VOCAB_PAD), jnp.float32),
        grid_spec=pltpu.PrefetchScalarGridSpec(
            num_scalar_prefetch=1,
            grid=(n_tiles,),
            in_specs=[
                # weights / embedding table: full arrays, resident across the grid
                pl.BlockSpec((EMB_ROWS_PAD, EMB_PAD), lambda i, idx: (0, 0)),
                pl.BlockSpec((EMB_PAD, HIDDEN), lambda i, idx: (0, 0)),
                pl.BlockSpec((EMB_PAD, HIDDEN), lambda i, idx: (0, 0)),
                pl.BlockSpec((1, HIDDEN), lambda i, idx: (0, 0)),
                pl.BlockSpec((HIDDEN, VOCAB_PAD), lambda i, idx: (0, 0)),
                pl.BlockSpec((1, VOCAB_PAD), lambda i, idx: (0, 0)),
            ],
            out_specs=pl.BlockSpec((TILE_M, VOCAB_PAD), lambda i, idx: (i, 0)),
            scratch_shapes=[
                pltpu.VMEM((TILE_M, EMB_PAD), jnp.float32),
                pltpu.VMEM((TILE_M, EMB_PAD), jnp.float32),
            ],
        ),
        compiler_params=pltpu.CompilerParams(
            dimension_semantics=("parallel",),   # batch tiles are independent (v7x: 2 TCs)
        ),
        cost_estimate=cost,
    )(idx_flat, emb_pad, w1a, w1b, b1, w2, b2p)

    return out[:n, :VOCAB]


def init_params(key):
    k_emb, k_w1, k_b1, k_w2, k_b2 = jax.random.split(key, 5)
    in1 = CONTEXT_SIZE * N_DIM
    emb_table = jax.random.normal(k_emb, (VOCAB, N_DIM), jnp.float32)
    lim1 = 1.0 / float(in1) ** 0.5
    w1_t = jax.random.uniform(k_w1, (in1, HIDDEN), jnp.float32, -lim1, lim1)
    b1 = jax.random.uniform(k_b1, (1, HIDDEN), jnp.float32, -lim1, lim1)
    lim2 = 1.0 / float(HIDDEN) ** 0.5
    w2_t = jax.random.uniform(k_w2, (HIDDEN, VOCAB), jnp.float32, -lim2, lim2)
    b2 = jax.random.uniform(k_b2, (1, VOCAB), jnp.float32, -lim2, lim2)
    logical = (emb_table, w1_t, b1, w2_t, b2)

    # Padded / split layouts for the kernel.
    emb_pad = jnp.zeros((EMB_ROWS_PAD, EMB_PAD), jnp.float32).at[:VOCAB, :N_DIM].set(emb_table)
    w1a = jnp.zeros((EMB_PAD, HIDDEN), jnp.float32).at[:N_DIM].set(w1_t[:N_DIM])      # word 0 dims
    w1b = jnp.zeros((EMB_PAD, HIDDEN), jnp.float32).at[:N_DIM].set(w1_t[N_DIM:])      # word 1 dims
    w2 = jnp.zeros((HIDDEN, VOCAB_PAD), jnp.float32).at[:, :VOCAB].set(w2_t)
    b2p = jnp.full((1, VOCAB_PAD), -1e30, jnp.float32).at[:, :VOCAB].set(b2)          # mask pad lanes
    padded = (emb_pad, w1a, w1b, b1, w2, b2p)
    return logical, padded


def reference_forward(x_idx, emb_table, w1_t, b1, w2_t, b2):
    """Plain-JAX reference matching the PyTorch forward (per context row)."""
    emb = jnp.take(emb_table, x_idx, axis=0).reshape(x_idx.shape[0], -1)
    h = jnp.maximum(emb @ w1_t + b1, 0.0)
    logits = h @ w2_t + b2
    return jax.nn.log_softmax(logits, axis=-1)


if __name__ == "__main__":
    key = jax.random.PRNGKey(0)
    logical_params, padded_params = init_params(key)

    # Batch: every CONTEXT_SIZE-gram context in the sonnet (like the chapter's loop).
    contexts = [[word_to_idx[sentence[i + j]] for j in range(CONTEXT_SIZE)]
                for i in range(len(sentence) - CONTEXT_SIZE)]
    x_idx = jnp.array(contexts, dtype=jnp.int32)           # (N, 2)

    fwd = jax.jit(ngram_forward)
    log_prob = jax.block_until_ready(fwd(x_idx, padded_params))

    # sanity: shape, rows sum to 1 in prob space, matches pure-JAX reference
    assert log_prob.shape == (x_idx.shape[0], VOCAB)
    assert jnp.allclose(jnp.sum(jnp.exp(log_prob), axis=-1), 1.0, atol=1e-4)
    ref = reference_forward(x_idx, *logical_params)
    assert float(jnp.max(jnp.abs(log_prob - ref))) < 1e-2

    print("KERNEL_OK")
</pallas_src>

<mosaic_0001>
module attributes {stable_mosaic.version = 11 : i64} {
  func.func @ngram_kernel(%arg0: i32, %arg1: memref<256xi32, #tpu.memory_space<smem>>, %arg2: memref<128x128xf32, #tpu.memory_space<vmem>>, %arg3: memref<128x128xf32, #tpu.memory_space<vmem>>, %arg4: memref<128x128xf32, #tpu.memory_space<vmem>>, %arg5: memref<1x128xf32, #tpu.memory_space<vmem>>, %arg6: memref<128x128xf32, #tpu.memory_space<vmem>>, %arg7: memref<1x128xf32, #tpu.memory_space<vmem>>, %arg8: memref<128x128xf32, #tpu.memory_space<vmem>>, %arg9: memref<128x128xf32, #tpu.memory_space<vmem>>, %arg10: memref<128x128xf32, #tpu.memory_space<vmem>>) attributes {dimension_semantics = [#tpu.dimension_semantics<parallel>], iteration_bounds = array<i64: 1>, scalar_prefetch = 1 : i64, scratch_operands = 2 : i64, tpu.core_type = #tpu.core_type<tc>, window_params = [{pipeline_mode = #tpu.pipeline_mode<synchronous>, transform_indices = @transform_0, window_bounds = array<i64: 128, 128>}, {pipeline_mode = #tpu.pipeline_mode<synchronous>, transform_indices = @transform_1, window_bounds = array<i64: 128, 128>}, {pipeline_mode = #tpu.pipeline_mode<synchronous>, transform_indices = @transform_2, window_bounds = array<i64: 128, 128>}, {pipeline_mode = #tpu.pipeline_mode<synchronous>, transform_indices = @transform_3, window_bounds = array<i64: 1, 128>}, {pipeline_mode = #tpu.pipeline_mode<synchronous>, transform_indices = @transform_4, window_bounds = array<i64: 128, 128>}, {pipeline_mode = #tpu.pipeline_mode<synchronous>, transform_indices = @transform_5, window_bounds = array<i64: 1, 128>}, {transform_indices = @transform_6, window_bounds = array<i64: 128, 128>}]} {
    %c0_i32 = arith.constant 0 : i32
    %c128_i32 = arith.constant 128 : i32
    %0 = arith.addi %c0_i32, %c128_i32 : i32
    %c1_i32 = arith.constant 1 : i32
    scf.for %arg11 = %c0_i32 to %0 step %c1_i32  : i32 {
      %c128_i32_21 = arith.constant 128 : i32
      %29 = arith.muli %arg0, %c128_i32_21 : i32
      %30 = arith.addi %29, %arg11 : i32
      %c2_i32 = arith.constant 2 : i32
      %31 = arith.muli %30, %c2_i32 : i32
      %32 = arith.index_cast %31 : i32 to index
      %33 = memref.load %arg1[%32] : memref<256xi32, #tpu.memory_space<smem>>
      %c2_i32_22 = arith.constant 2 : i32
      %34 = arith.muli %30, %c2_i32_22 : i32
      %c1_i32_23 = arith.constant 1 : i32
      %35 = arith.addi %34, %c1_i32_23 : i32
      %36 = arith.index_cast %35 : i32 to index
      %37 = memref.load %arg1[%36] : memref<256xi32, #tpu.memory_space<smem>>
      %38 = arith.index_cast %33 : i32 to index
      %c0_24 = arith.constant 0 : index
      %39 = vector.load %arg2[%38, %c0_24] : memref<128x128xf32, #tpu.memory_space<vmem>>, vector<1x128xf32>
      %40 = arith.index_cast %arg11 : i32 to index
      %c0_25 = arith.constant 0 : index
      %41 = vector.load %arg9[%40, %c0_25] : memref<128x128xf32, #tpu.memory_space<vmem>>, vector<1x128xf32>
      tpu.vector_store %arg9[%40, %c0_25], %39 {strides = array<i32>} : memref<128x128xf32, #tpu.memory_space<vmem>>, vector<1x128xf32>,
      %42 = arith.index_cast %37 : i32 to index
      %c0_26 = arith.constant 0 : index
      %43 = vector.load %arg2[%42, %c0_26] : memref<128x128xf32, #tpu.memory_space<vmem>>, vector<1x128xf32>
      %44 = arith.index_cast %arg11 : i32 to index
      %c0_27 = arith.constant 0 : index
      %45 = vector.load %arg10[%44, %c0_27] : memref<128x128xf32, #tpu.memory_space<vmem>>, vector<1x128xf32>
      tpu.vector_store %arg10[%44, %c0_27], %43 {strides = array<i32>} : memref<128x128xf32, #tpu.memory_space<vmem>>, vector<1x128xf32>,
    }
    %c128_i32_0 = arith.constant 128 : i32
    %c0 = arith.constant 0 : index
    %c0_1 = arith.constant 0 : index
    %1 = vector.load %arg9[%c0, %c0_1] : memref<128x128xf32, #tpu.memory_space<vmem>>, vector<128x128xf32>
    %c0_2 = arith.constant 0 : index
    %c0_3 = arith.constant 0 : index
    %2 = vector.load %arg3[%c0_2, %c0_3] : memref<128x128xf32, #tpu.memory_space<vmem>>, vector<128x128xf32>
    %cst = arith.constant dense<0.000000e+00> : vector<128x128xf32>
    %3 = tpu.matmul %1, %2, %cst {dimension_numbers = #tpu.dot_dimension_numbers<[1], [0], [0], [1], [0, 0, 1, 1], [], []>} : vector<128x128xf32>, vector<128x128xf32>, vector<128x128xf32> -> vector<128x128xf32>
    %c0_4 = arith.constant 0 : index
    %c0_5 = arith.constant 0 : index
    %4 = vector.load %arg10[%c0_4, %c0_5] : memref<128x128xf32, #tpu.memory_space<vmem>>, vector<128x128xf32>
    %c0_6 = arith.constant 0 : index
    %c0_7 = arith.constant 0 : index
    %5 = vector.load %arg4[%c0_6, %c0_7] : memref<128x128xf32, #tpu.memory_space<vmem>>, vector<128x128xf32>
    %cst_8 = arith.constant dense<0.000000e+00> : vector<128x128xf32>
    %6 = tpu.matmul %4, %5, %cst_8 {dimension_numbers = #tpu.dot_dimension_numbers<[1], [0], [0], [1], [0, 0, 1, 1], [], []>} : vector<128x128xf32>, vector<128x128xf32>, vector<128x128xf32> -> vector<128x128xf32>
    %7 = arith.addf %3, %6 : vector<128x128xf32>
    %c0_9 = arith.constant 0 : index
    %c0_10 = arith.constant 0 : index
    %8 = vector.load %arg5[%c0_9, %c0_10] : memref<1x128xf32, #tpu.memory_space<vmem>>, vector<1x128xf32>
    %9 = vector.broadcast %8 : vector<1x128xf32> to vector<128x128xf32>
    %10 = arith.addf %7, %9 : vector<128x128xf32>
    %cst_11 = arith.constant 0.000000e+00 : f32
    %11 = vector.broadcast %cst_11 : f32 to vector<128x128xf32>
    %12 = arith.maximumf %10, %11 : vector<128x128xf32>
    %c0_12 = arith.constant 0 : index
    %c0_13 = arith.constant 0 : index
    %13 = vector.load %arg6[%c0_12, %c0_13] : memref<128x128xf32, #tpu.memory_space<vmem>>, vector<128x128xf32>
    %cst_14 = arith.constant dense<0.000000e+00> : vector<128x128xf32>
    %14 = tpu.matmul %12, %13, %cst_14 {dimension_numbers = #tpu.dot_dimension_numbers<[1], [0], [0], [1], [0, 0, 1, 1], [], []>} : vector<128x128xf32>, vector<128x128xf32>, vector<128x128xf32> -> vector<128x128xf32>
    %c0_15 = arith.constant 0 : index
    %c0_16 = arith.constant 0 : index
    %15 = vector.load %arg7[%c0_15, %c0_16] : memref<1x128xf32, #tpu.memory_space<vmem>>, vector<1x128xf32>
    %16 = vector.broadcast %15 : vector<1x128xf32> to vector<128x128xf32>
    %17 = arith.addf %14, %16 : vector<128x128xf32>
    %cst_17 = arith.constant dense<0xFF800000> : vector<128xf32>
    %18 = vector.multi_reduction <maximumf>, %17, %cst_17 [1] : vector<128x128xf32> to vector<128xf32>
    %19 = vector.shape_cast %18 : vector<128xf32> to vector<128x1xf32>
    %20 = vector.broadcast %19 : vector<128x1xf32> to vector<128x128xf32>
    %21 = arith.subf %17, %20 : vector<128x128xf32>
    %22 = math.exp %21 : vector<128x128xf32>
    %cst_18 = arith.constant dense<0.000000e+00> : vector<128xf32>
    %23 = vector.multi_reduction <add>, %22, %cst_18 [1] : vector<128x128xf32> to vector<128xf32>
    %24 = vector.shape_cast %23 : vector<128xf32> to vector<128x1xf32>
    %25 = math.log %24 : vector<128x1xf32>
    %26 = vector.broadcast %25 : vector<128x1xf32> to vector<128x128xf32>
    %27 = arith.subf %21, %26 : vector<128x128xf32>
    %c0_19 = arith.constant 0 : index
    %c0_20 = arith.constant 0 : index
    %28 = vector.load %arg8[%c0_19, %c0_20] : memref<128x128xf32, #tpu.memory_space<vmem>>, vector<128x128xf32>
    tpu.vector_store %arg8[%c0_19, %c0_20], %27 {strides = array<i32>} : memref<128x128xf32, #tpu.memory_space<vmem>>, vector<128x128xf32>,
    return
  }
  func.func @transform_0(%arg0: i32, %arg1: memref<256xi32, #tpu.memory_space<smem>>) -> (i32, i32) {
    %c0_i32 = arith.constant 0 : i32
    %c0_i32_0 = arith.constant 0 : i32
    %c0_i32_1 = arith.constant 0 : i32
    return %c0_i32, %c0_i32_0 : i32, i32
  }
  func.func @transform_1(%arg0: i32, %arg1: memref<256xi32, #tpu.memory_space<smem>>) -> (i32, i32) {
    %c0_i32 = arith.constant 0 : i32
    %c0_i32_0 = arith.constant 0 : i32
    %c0_i32_1 = arith.constant 0 : i32
    return %c0_i32, %c0_i32_0 : i32, i32
  }
  func.func @transform_2(%arg0: i32, %arg1: memref<256xi32, #tpu.memory_space<smem>>) -> (i32, i32) {
    %c0_i32 = arith.constant 0 : i32
    %c0_i32_0 = arith.constant 0 : i32
    %c0_i32_1 = arith.constant 0 : i32
    return %c0_i32, %c0_i32_0 : i32, i32
  }
  func.func @transform_3(%arg0: i32, %arg1: memref<256xi32, #tpu.memory_space<smem>>) -> (i32, i32) {
    %c0_i32 = arith.constant 0 : i32
    %c0_i32_0 = arith.constant 0 : i32
    %c0_i32_1 = arith.constant 0 : i32
    return %c0_i32, %c0_i32_0 : i32, i32
  }
  func.func @transform_4(%arg0: i32, %arg1: memref<256xi32, #tpu.memory_space<smem>>) -> (i32, i32) {
    %c0_i32 = arith.constant 0 : i32
    %c0_i32_0 = arith.constant 0 : i32
    %c0_i32_1 = arith.constant 0 : i32
    return %c0_i32, %c0_i32_0 : i32, i32
  }
  func.func @transform_5(%arg0: i32, %arg1: memref<256xi32, #tpu.memory_space<smem>>) -> (i32, i32) {
    %c0_i32 = arith.constant 0 : i32
    %c0_i32_0 = arith.constant 0 : i32
    %c0_i32_1 = arith.constant 0 : i32
    return %c0_i32, %c0_i32_0 : i32, i32
  }
  func.func @transform_6(%arg0: i32, %arg1: memref<256xi32, #tpu.memory_space<smem>>) -> (i32, i32) {
    %c0_i32 = arith.constant 0 : i32
    %c0_i32_0 = arith.constant 0 : i32
    return %arg0, %c0_i32 : i32, i32
  }
}

</mosaic_0001>

<bundles_post_ra>
// kernel: ngram_forward.1
= control target key start
LH: loop header
LB: loop body
LE: loop exit
PB: predicated region body
PF: predicated region fallthrough
CT: control target
= control target key end

     0   :  { %s748_s27 = smov [#allocation5]   ;;  %s1108_s0 = inlined_call_operand.vmem [shape: s32[256], index: 0, kind: input, shape index: {}]   ;;  %s1109_s1 = inlined_call_operand.vmem [shape: f32[128,128], index: 1, kind: input, shape index: {}]   ;;  %s1110_s2 = inlined_call_operand.vmem [shape: f32[128,128], index: 2, kind: input, shape index: {}]   ;;  %s1111_s3 = inlined_call_operand.vmem [shape: f32[128,128], index: 3, kind: input, shape index: {}]   ;;  %s1112_s4 = inlined_call_operand.vmem [shape: f32[1,128], index: 4, kind: input, shape index: {}]   ;;  %s1113_s5 = inlined_call_operand.hbm [shape: f32[128,128], index: 5, kind: input, shape index: {}]   ;;  %s1114_s6 = inlined_call_operand.vmem [shape: f32[1,128], index: 6, kind: input, shape index: {}]   ;;  %s1115_s7 = inlined_call_operand.vmem [shape: f32[128,128], index: 7, kind: output, shape index: {}]  }
   0x1   :  { %s13_s26 = sshll.u32 %s1108_s0, 4  ;;  %s14_s26 = int_to_ptr.vmem [resolvable:$true] %s13_s26 }
   0x2   :  { %16 = dma.vmem_to_smem %s14_s26, 32, %s748_s27, [#allocation4] }
   0x3   :  { %740 = dma.done.wait [#allocation4], 32 }
   0x4   :  { %741 = vsyncadd [#allocation4], 4294967264 }
   0x5   :  { %19 = sfence }
   0x6   :  { %20 = vsyncpa [#allocation7], 0  ;;  %s33_s30 = sshll.u32 %s1113_s5, 4  ;;  %s749_s8 = smov [#allocation6]   ;;  %s34_s30 = int_to_ptr.hbm [resolvable:$true] %s33_s30 }
   0x7   :  { %s35_s9 = sshll.u32 %s749_s8, 4  ;;  %s750_s10 = smov 128   ;;  %s36_s9 = int_to_ptr.vmem [resolvable:$true] %s35_s9 }
   0x8   :  { %s751_s11 = smov 8  }
   0x9   :  { %41 = dma.hbm_to_vmem [thread:$0]  %s34_s30, 2048, %s36_s9, [#allocation7], %s750_s10, %s750_s10, %s751_s11  }
   0xa   :  { %742 = dma.done.wait [#allocation7], 2048  }
   0xb   :  { %743 = vsyncadd [#allocation7], 4294965248  ;;  %s744_s0 = smov 0  }
   0xc LB: > { %s573_s12 = sshll.u32 %s746_s0, 1  ;;  %s62_s21 = scalar_lea.vmem [#allocation2], %s746_s0  ;;  %s746_s0 = sphi %s744_s0, %s53_s0  }
   0xd   : > { %s57_s13 = sld [smem:[#allocation5 + %s573_s12]]  ;;  %s58_s14 = sadd.s32 1, %s573_s12 }
   0xe   : > { %s59_s15 = sld [smem:[#allocation5 + %s58_s14]]  ;;  %s66_s22 = scalar_lea.vmem [#allocation3], %s746_s0 }
   0xf   : > { %s53_s0 = sadd.s32 1, %s746_s0  }
  0x10   : > { %p50_p0 = scmp.ge.s32.totalorder %s53_s0, 128  }
  0x11   :  { %v131_v2 = vld [vmem:[%s1111_s3 + $0x78] sm:$0xff] (%p50_p0)  ;;  %v130_v4 = vld [vmem:[%s1111_s3 + $0x70] sm:$0xff] (%p50_p0)  ;;  %v129_v6 = vld [vmem:[%s1111_s3 + $0x68] sm:$0xff] (%p50_p0) }
  0x12   :  { %52 = sbr.rel (!%p50_p0) target bundleno = 12 (0xc), region = 59  ;;  %v810_v3 = vld [vmem:[%s1110_s2 + $0x78] sm:$0xff] (%p50_p0)  ;;  %132 = vmatpush.msra.mxu0 (%p50_p0), %v131_v2  ;;  %574 = vmatpush.msra.mxu3 (%p50_p0), %v131_v2  ;;  %v818_v5 = vld [vmem:[%s1110_s2 + $0x70] sm:$0xff] (%p50_p0)  ;;  %v827_v7 = vld [vmem:[%s1110_s2 + $0x68] sm:$0xff] (%p50_p0) }
  0x13   : > { %s60_s5 = scalar_lea.vmem %s1109_s1, %s57_s13  ;;  %197 = vmatpush.msra.mxu1 (%p50_p0), %v810_v3  ;;  %v128_v8 = vld [vmem:[%s1111_s3 + $0x60] sm:$0xff] (%p50_p0)  ;;  %v127_v10 = vld [vmem:[%s1111_s3 + $0x58] sm:$0xff] (%p50_p0)  ;;  %v126_v12 = vld [vmem:[%s1111_s3 + $0x50] sm:$0xff] (%p50_p0) }
  0x14   : > { %v61_v0 = vld [vmem:[%s60_s5] sm:$0x1]  ;;  %s64_s20 = scalar_lea.vmem %s1109_s1, %s59_s15  ;;  %133 = vmatpush.msra.mxu0 (%p50_p0), %v130_v4  ;;  %575 = vmatpush.msra.mxu3 (%p50_p0), %v130_v4  ;;  %v845_v11 = vld [vmem:[%s1110_s2 + $0x58] sm:$0xff] (%p50_p0)  ;;  %v854_v13 = vld [vmem:[%s1110_s2 + $0x50] sm:$0xff] (%p50_p0) }
  0x15   : > { %63 = vst [vmem:[%s62_s21] sm:$0x1] %v61_v0  ;;  %v65_v1 = vld [vmem:[%s64_s20] sm:$0x1]  ;;  %198 = vmatpush.msra.mxu1 (%p50_p0), %v818_v5  ;;  %v125_v14 = vld [vmem:[%s1111_s3 + $0x48] sm:$0xff] (%p50_p0)  ;;  %v123_v18 = vld [vmem:[%s1111_s3 + $0x38] sm:$0xff] (%p50_p0) }
  0x16   : > { %67 = vst [vmem:[%s66_s22] sm:$0x1] %v65_v1  ;;  %134 = vmatpush.msra.mxu0 (%p50_p0), %v129_v6  ;;  %576 = vmatpush.msra.mxu3 (%p50_p0), %v129_v6  ;;  %v836_v9 = vld [vmem:[%s1110_s2 + $0x60] sm:$0xff] (%p50_p0)  ;;  %v863_v15 = vld [vmem:[%s1110_s2 + $0x48] sm:$0xff] (%p50_p0)  ;;  %v881_v19 = vld [vmem:[%s1110_s2 + $0x38] sm:$0xff] (%p50_p0) }
  0x17   :  { %199 = vmatpush.msra.mxu1 %v827_v7  ;;  %v124_v16 = vld [vmem:[%s1111_s3 + $0x40] sm:$0xff]  ;;  %v122_v20 = vld [vmem:[%s1111_s3 + $0x30] sm:$0xff]  ;;  %v121_v22 = vld [vmem:[%s1111_s3 + $0x28] sm:$0xff] }
  0x18   :  { %135 = vmatpush.msra.mxu0 %v128_v8  ;;  %577 = vmatpush.msra.mxu3 %v128_v8  ;;  %v872_v17 = vld [vmem:[%s1110_s2 + $0x40] sm:$0xff]  ;;  %v90_v21 = vld [vmem:[%s1110_s2 + $0x30] sm:$0xff]  ;;  %v89_v23 = vld [vmem:[%s1110_s2 + $0x28] sm:$0xff] }
  0x19   :  { %200 = vmatpush.msra.mxu1 %v836_v9  ;;  %v120_v24 = vld [vmem:[%s1111_s3 + $0x20] sm:$0xff]  ;;  %v119_v26 = vld [vmem:[%s1111_s3 + $0x18] sm:$0xff]  ;;  %v118_v28 = vld [vmem:[%s1111_s3 + $0x10] sm:$0xff] }
  0x1a   :  { %136 = vmatpush.msra.mxu0 %v127_v10  ;;  %578 = vmatpush.msra.mxu3 %v127_v10  ;;  %v88_v25 = vld [vmem:[%s1110_s2 + $0x20] sm:$0xff]  ;;  %v87_v27 = vld [vmem:[%s1110_s2 + $0x18] sm:$0xff]  ;;  %v86_v29 = vld [vmem:[%s1110_s2 + $0x10] sm:$0xff] }
  0x1b   :  { %201 = vmatpush.msra.mxu1 %v845_v11  ;;  %v117_v30 = vld [vmem:[%s1111_s3 + $0x8] sm:$0xff]  ;;  %v116_v32 = vld [vmem:[%s1111_s3] sm:$0xff]  ;;  %v313_v58 = vld [vmem:[#allocation6 + $0x78] sm:$0xff] }
  0x1c   :  { %137 = vmatpush.msra.mxu0 %v126_v12  ;;  %579 = vmatpush.msra.mxu3 %v126_v12  ;;  %v85_v31 = vld [vmem:[%s1110_s2 + $0x8] sm:$0xff]  ;;  %v84_v33 = vld [vmem:[%s1110_s2] sm:$0xff]  ;;  %v70_v42 = vld [vmem:[#allocation2 + $0x10] sm:$0xff] }
  0x1d   :  { %202 = vmatpush.msra.mxu1 %v854_v13  ;;  %v100_v34 = vld [vmem:[#allocation3] sm:$0xff]  ;;  %v101_v37 = vld [vmem:[#allocation3 + $0x8] sm:$0xff]  ;;  %v102_v40 = vld [vmem:[#allocation3 + $0x10] sm:$0xff]  ;;  %318 = vmatpush.msra.mxu2 %v313_v58 }
  0x1e   :  { %138 = vmatpush.msra.mxu0 %v125_v14  ;;  %580 = vmatpush.msra.mxu3 %v125_v14  ;;  %v112_v35 = vld [vmem:[#allocation3 + $0x60] sm:$0xff]  ;;  %v113_v38 = vld [vmem:[#allocation3 + $0x68] sm:$0xff]  ;;  %v114_v41 = vld [vmem:[#allocation3 + $0x70] sm:$0xff] }
  0x1f   :  { %203 = vmatpush.msra.mxu1 %v863_v15  ;;  %v68_v36 = vld [vmem:[#allocation2] sm:$0xff]  ;;  %v69_v39 = vld [vmem:[#allocation2 + $0x8] sm:$0xff]  ;;  %v103_v43 = vld [vmem:[#allocation3 + $0x18] sm:$0xff] }
  0x20   :  { %139 = vmatpush.msra.mxu0 %v124_v16  ;;  %581 = vmatpush.msra.mxu3 %v124_v16  ;;  %v115_v44 = vld [vmem:[#allocation3 + $0x78] sm:$0xff]  ;;  %v104_v46 = vld [vmem:[#allocation3 + $0x20] sm:$0xff]  ;;  %v105_v49 = vld [vmem:[#allocation3 + $0x28] sm:$0xff] }
  0x21   :  { %204 = vmatpush.msra.mxu1 %v872_v17  ;;  %v71_v45 = vld [vmem:[#allocation2 + $0x18] sm:$0xff]  ;;  %v72_v47 = vld [vmem:[#allocation2 + $0x20] sm:$0xff]  ;;  %v73_v50 = vld [vmem:[#allocation2 + $0x28] sm:$0xff] }
  0x22   :  { %140 = vmatpush.msra.mxu0 %v123_v18  ;;  %582 = vmatpush.msra.mxu3 %v123_v18  ;;  %v80_v48 = vld [vmem:[#allocation2 + $0x60] sm:$0xff]  ;;  %v81_v51 = vld [vmem:[#allocation2 + $0x68] sm:$0xff]  ;;  %v106_v52 = vld [vmem:[#allocation3 + $0x30] sm:$0xff] }
  0x23   :  { %205 = vmatpush.msra.mxu1 %v881_v19  ;;  %v74_v53 = vld [vmem:[#allocation2 + $0x30] sm:$0xff]  ;;  %v107_v55 = vld [vmem:[#allocation3 + $0x38] sm:$0xff]  ;;  %v311_v60 = vld [vmem:[#allocation6 + $0x68] sm:$0xff] }
  0x24   :  { %141 = vmatpush.msra.mxu0 %v122_v20  ;;  %583 = vmatpush.msra.mxu3 %v122_v20  ;;  %v82_v54 = vld [vmem:[#allocation2 + $0x70] sm:$0xff]  ;;  %v75_v56 = vld [vmem:[#allocation2 + $0x38] sm:$0xff]  ;;  %v108_v61 = vld [vmem:[#allocation3 + $0x40] sm:$0xff] }
  0x25   :  { %206 = vmatpush.msra.mxu1 %v90_v21  ;;  %v83_v57 = vld [vmem:[#allocation2 + $0x78] sm:$0xff]  ;;  %v312_v59 = vld [vmem:[#allocation6 + $0x70] sm:$0xff]  ;;  %v310_v62 = vld [vmem:[#allocation6 + $0x60] sm:$0xff] }
  0x26   :  { %142 = vmatpush.msra.mxu0 %v121_v22  ;;  %584 = vmatpush.msra.mxu3 %v121_v22  ;;  %v76_v63 = vld [vmem:[#allocation2 + $0x40] sm:$0xff]  ;;  %v309_v0 = vld [vmem:[#allocation6 + $0x58] sm:$0xff]  ;;  %v308_v1 = vld [vmem:[#allocation6 + $0x50] sm:$0xff] }
  0x27   :  { %207 = vmatpush.msra.mxu1 %v89_v23  ;;  %319 = vmatpush.msra.mxu2 %v312_v59  ;;  %v307_v2 = vld [vmem:[#allocation6 + $0x48] sm:$0xff]  ;;  %v306_v4 = vld [vmem:[#allocation6 + $0x40] sm:$0xff]  ;;  %v305_v6 = vld [vmem:[#allocation6 + $0x38] sm:$0xff] }
  0x28   :  { %143 = vmatpush.msra.mxu0 %v120_v24  ;;  %585 = vmatpush.msra.mxu3 %v120_v24  ;;  %v303_v8 = vld [vmem:[#allocation6 + $0x28] sm:$0xff]  ;;  %v302_v10 = vld [vmem:[#allocation6 + $0x20] sm:$0xff]  ;;  %v111_v12 = vld [vmem:[#allocation3 + $0x58] sm:$0xff] }
  0x29   :  { %208 = vmatpush.msra.mxu1 %v88_v25  ;;  %320 = vmatpush.msra.mxu2 %v311_v60  ;;  %v301_v14 = vld [vmem:[#allocation6 + $0x18] sm:$0xff]  ;;  %v299_v16 = vld [vmem:[#allocation6 + $0x8] sm:$0xff] }
  0x2a   :  { %144 = vmatpush.msra.mxu0 %v119_v26  ;;  %586 = vmatpush.msra.mxu3 %v119_v26 }
  0x2b   :  { %209 = vmatpush.msra.mxu1 %v87_v27  ;;  %321 = vmatpush.msra.mxu2 %v310_v62 }
  0x2c   :  { %145 = vmatpush.msra.mxu0 %v118_v28  ;;  %587 = vmatpush.msra.mxu3 %v118_v28 }
  0x2d   :  { %210 = vmatpush.msra.mxu1 %v86_v29  ;;  %322 = vmatpush.msra.mxu2 %v309_v0 }
  0x2e   :  { %146 = vmatpush.msra.mxu0 %v117_v30  ;;  %588 = vmatpush.msra.mxu3 %v117_v30 }
  0x2f   :  { %211 = vmatpush.msra.mxu1 %v85_v31  ;;  %323 = vmatpush.msra.mxu2 %v308_v1 }
  0x30   :  { %147 = vmatpush.msra.mxu0 %v116_v32  ;;  %589 = vmatpush.msra.mxu3 %v116_v32 }
  0x31   :  { %212 = vmatpush.msra.mxu1 %v84_v33  ;;  %148 = vmatmul.f32.vlgmr.msra.gmra.mxu0 %v100_v34 }
  0x32   :  { %184 = vmatmul.f32.vlgmr.msra.gmra.mxu3 %v112_v35  ;;  %213 = vmatmul.f32.vlgmr.msra.gmra.mxu1 %v68_v36 }
  0x33   :  { %590 = vmatpush.msrb.mxu3 %v810_v3  ;;  %v109_v3 = vld [vmem:[#allocation3 + $0x48] sm:$0xff]  ;;  %324 = vmatpush.msra.mxu2 %v307_v2 }
  0x35   :  { %591 = vmatpush.msrb.mxu3 %v818_v5  ;;  %v77_v5 = vld [vmem:[#allocation2 + $0x48] sm:$0xff]  ;;  %325 = vmatpush.msra.mxu2 %v306_v4 }
  0x37   :  { %592 = vmatpush.msrb.mxu3 %v827_v7  ;;  %v304_v7 = vld [vmem:[#allocation6 + $0x30] sm:$0xff]  ;;  %326 = vmatpush.msra.mxu2 %v305_v6 }
  0x39   :  { %593 = vmatpush.msrb.mxu3 %v836_v9  ;;  %151 = vmatmul.f32.gmra.mxu0 %v101_v37  ;;  %v110_v9 = vld [vmem:[#allocation3 + $0x50] sm:$0xff] }
  0x3a   :  { %187 = vmatmul.f32.gmra.mxu3 %v113_v38  ;;  %216 = vmatmul.f32.gmra.mxu1 %v69_v39 }
  0x3b   :  { %594 = vmatpush.msrb.mxu3 %v845_v11  ;;  %327 = vmatpush.msra.mxu2 %v304_v7  ;;  %v78_v11 = vld [vmem:[#allocation2 + $0x50] sm:$0xff] }
  0x3d   :  { %595 = vmatpush.msrb.mxu3 %v854_v13  ;;  %328 = vmatpush.msra.mxu2 %v303_v8  ;;  %v79_v13 = vld [vmem:[#allocation2 + $0x58] sm:$0xff] }
  0x3f   :  { %596 = vmatpush.msrb.mxu3 %v863_v15  ;;  %329 = vmatpush.msra.mxu2 %v302_v10  ;;  %v300_v15 = vld [vmem:[#allocation6 + $0x10] sm:$0xff] }
  0x41   :  { %597 = vmatpush.msrb.mxu3 %v872_v17  ;;  %154 = vmatmul.f32.gmra.mxu0 %v102_v40  ;;  %v298_v17 = vld [vmem:[#allocation6] sm:$0xff] }
  0x42   :  { %190 = vmatmul.f32.gmra.mxu3 %v114_v41  ;;  %219 = vmatmul.f32.gmra.mxu1 %v70_v42 }
  0x43   :  { %598 = vmatpush.msrb.mxu3 %v881_v19  ;;  %330 = vmatpush.msra.mxu2 %v301_v14  ;;  %v939_v19 = vld [vmem:[%s1112_s4] ss:$0 sm:$0xff] }
  0x45   :  { %599 = vmatpush.msrb.mxu3 %v90_v21  ;;  %331 = vmatpush.msra.mxu2 %v300_v15 }
  0x47   :  { %600 = vmatpush.msrb.mxu3 %v89_v23  ;;  %332 = vmatpush.msra.mxu2 %v299_v16 }
  0x49   :  { %601 = vmatpush.msrb.mxu3 %v88_v25  ;;  %157 = vmatmul.f32.gmra.mxu0 %v103_v43 }
  0x4a   :  { %193 = vmatmul.f32.gmra.mxu3 %v115_v44  ;;  %222 = vmatmul.f32.gmra.mxu1 %v71_v45 }
  0x4b   :  { %602 = vmatpush.msrb.mxu3 %v87_v27  ;;  %333 = vmatpush.msra.mxu2 %v298_v17 }
  0x4d   :  { %603 = vmatpush.msrb.mxu3 %v86_v29 }
  0x4f   :  { %604 = vmatpush.msrb.mxu3 %v85_v31 }
  0x51   :  { %605 = vmatpush.msrb.mxu3 %v84_v33  ;;  %160 = vmatmul.f32.gmra.mxu0 %v104_v46 }
  0x52   :  { %225 = vmatmul.f32.gmra.mxu1 %v72_v47  ;;  %249 = vmatmul.f32.vlgmr.msrb.gmra.mxu3 %v80_v48 }
  0x53   :  { %606 = vmatpush.msra.mxu3 %v313_v58 }
  0x55   :  { %607 = vmatpush.msra.mxu3 %v312_v59 }
  0x57   :  { %608 = vmatpush.msra.mxu3 %v311_v60 }
  0x59   :  { %163 = vmatmul.f32.gmra.mxu0 %v105_v49  ;;  %609 = vmatpush.msra.mxu3 %v310_v62 }
  0x5a   :  { %228 = vmatmul.f32.gmra.mxu1 %v73_v50  ;;  %252 = vmatmul.f32.gmra.mxu3 %v81_v51 }
  0x5b   :  { %610 = vmatpush.msra.mxu3 %v309_v0 }
  0x5d   :  { %611 = vmatpush.msra.mxu3 %v308_v1 }
  0x5f   :  { %612 = vmatpush.msra.mxu3 %v307_v2 }
  0x61   :  { %166 = vmatmul.f32.gmra.mxu0 %v106_v52  ;;  %613 = vmatpush.msra.mxu3 %v306_v4 }
  0x62   :  { %231 = vmatmul.f32.gmra.mxu1 %v74_v53  ;;  %255 = vmatmul.f32.gmra.mxu3 %v82_v54 }
  0x63   :  { %614 = vmatpush.msra.mxu3 %v305_v6 }
  0x65   :  { %615 = vmatpush.msra.mxu3 %v304_v7 }
  0x67   :  { %616 = vmatpush.msra.mxu3 %v303_v8 }
  0x69   :  { %169 = vmatmul.f32.gmra.mxu0 %v107_v55  ;;  %617 = vmatpush.msra.mxu3 %v302_v10 }
  0x6a   :  { %234 = vmatmul.f32.gmra.mxu1 %v75_v56  ;;  %258 = vmatmul.f32.gmra.mxu3 %v83_v57 }
  0x6b   :  { %618 = vmatpush.msra.mxu3 %v301_v14 }
  0x6d   :  { %619 = vmatpush.msra.mxu3 %v300_v15 }
  0x6f   :  { %620 = vmatpush.msra.mxu3 %v299_v16 }
  0x71   :  { %172 = vmatmul.f32.gmra.mxu0 %v108_v61  ;;  %621 = vmatpush.msra.mxu3 %v298_v17 }
  0x72   :  { %237 = vmatmul.f32.gmra.mxu1 %v76_v63 }
  0x79   :  { %175 = vmatmul.f32.gmra.mxu0 %v109_v3 }
  0x7a   :  { %240 = vmatmul.f32.gmra.mxu1 %v77_v5 }
  0x81   :  { %178 = vmatmul.f32.gmra.mxu0 %v110_v9 }
  0x82   :  { %243 = vmatmul.f32.gmra.mxu1 %v78_v11 }
  0x89   :  { %181 = vmatmul.f32.gmra.mxu0 %v111_v12 }
  0x8a   :  { %246 = vmatmul.f32.gmra.mxu1 %v79_v13 }
  0xae   :  { %v149_v18 = vpop.f32.mrf.mxu0 }
  0xaf   :  { %v214_v20 = vpop.f32.mrf.mxu1 }
  0xb0   :  { %v215_v21 = vadd.f32 %v214_v20, %v149_v18 }
  0xb2   :  { %v266_v22 = vadd.f32 %v939_v19, %v215_v21 }
  0xb4   :  { %v282_v23 = vmax.f32 %v266_v22, 0.0 }
  0xb5   :  { %v185_v24 = vpop.f32.mrf.mxu3 }
  0xb6   :  { %334 = vmatmul.f32.vlgmr.msra.gmra.mxu2 %v282_v23  ;;  %v152_v25 = vpop.f32.mrf.mxu0 }
  0xb7   :  { %v217_v26 = vpop.f32.mrf.mxu1 }
  0xb8   :  { %v218_v27 = vadd.f32 %v217_v26, %v152_v25 }
  0xba   :  { %v267_v28 = vadd.f32 %v939_v19, %v218_v27 }
  0xbc   :  { %v283_v29 = vmax.f32 %v267_v28, 0.0 }
  0xbd   :  { %v188_v30 = vpop.f32.mrf.mxu3 }
  0xbe   :  { %337 = vmatmul.f32.gmra.mxu2 %v283_v29  ;;  %v155_v31 = vpop.f32.mrf.mxu0 }
  0xbf   :  { %v220_v32 = vpop.f32.mrf.mxu1 }
  0xc0   :  { %v221_v33 = vadd.f32 %v220_v32, %v155_v31 }
  0xc2   :  { %v268_v34 = vadd.f32 %v939_v19, %v221_v33 }
  0xc4   :  { %v284_v35 = vmax.f32 %v268_v34, 0.0 }
  0xc5   :  { %v191_v36 = vpop.f32.mrf.mxu3 }
  0xc6   :  { %340 = vmatmul.f32.gmra.mxu2 %v284_v35  ;;  %v158_v37 = vpop.f32.mrf.mxu0 }
  0xc7   :  { %v223_v38 = vpop.f32.mrf.mxu1 }
  0xc8   :  { %v224_v39 = vadd.f32 %v223_v38, %v158_v37 }
  0xca   :  { %v269_v40 = vadd.f32 %v939_v19, %v224_v39 }
  0xcc   :  { %v285_v41 = vmax.f32 %v269_v40, 0.0 }
  0xcd   :  { %v194_v42 = vpop.f32.mrf.mxu3 }
  0xce   :  { %343 = vmatmul.f32.gmra.mxu2 %v285_v41  ;;  %v161_v43 = vpop.f32.mrf.mxu0 }
  0xcf   :  { %v226_v44 = vpop.f32.mrf.mxu1 }
  0xd0   :  { %v227_v45 = vadd.f32 %v226_v44, %v161_v43 }
  0xd2   :  { %v270_v46 = vadd.f32 %v939_v19, %v227_v45 }
  0xd4   :  { %v286_v47 = vmax.f32 %v270_v46, 0.0 }
  0xd5   :  { %v250_v48 = vpop.f32.mrf.mxu3 }
  0xd6   :  { %v251_v49 = vadd.f32 %v250_v48, %v185_v24  ;;  %346 = vmatmul.f32.gmra.mxu2 %v286_v47  ;;  %v164_v50 = vpop.f32.mrf.mxu0 }
  0xd7   :  { %v229_v51 = vpop.f32.mrf.mxu1 }
  0xd8   :  { %v278_v52 = vadd.f32 %v939_v19, %v251_v49  ;;  %v230_v53 = vadd.f32 %v229_v51, %v164_v50 }
  0xda   :  { %v294_v54 = vmax.f32 %v278_v52, 0.0  ;;  %v271_v55 = vadd.f32 %v939_v19, %v230_v53 }
  0xdc   :  { %370 = vmatmul.f32.vlgmr.msra.gmra.mxu3 %v294_v54  ;;  %v287_v56 = vmax.f32 %v271_v55, 0.0 }
  0xdd   :  { %v253_v57 = vpop.f32.mrf.mxu3 }
  0xde   :  { %349 = vmatmul.f32.gmra.mxu2 %v287_v56  ;;  %v167_v58 = vpop.f32.mrf.mxu0  ;;  %v254_v59 = vadd.f32 %v253_v57, %v188_v30 }
  0xdf   :  { %v232_v60 = vpop.f32.mrf.mxu1 }
  0xe0   :  { %v233_v61 = vadd.f32 %v232_v60, %v167_v58  ;;  %v279_v62 = vadd.f32 %v939_v19, %v254_v59 }
  0xe2   :  { %v272_v63 = vadd.f32 %v939_v19, %v233_v61  ;;  %v295_v0 = vmax.f32 %v279_v62, 0.0 }
  0xe4   :  { %v288_v1 = vmax.f32 %v272_v63, 0.0  ;;  %373 = vmatmul.f32.gmra.mxu3 %v295_v0 }
  0xe5   :  { %v256_v2 = vpop.f32.mrf.mxu3 }
  0xe6   :  { %352 = vmatmul.f32.gmra.mxu2 %v288_v1  ;;  %v170_v3 = vpop.f32.mrf.mxu0  ;;  %v257_v4 = vadd.f32 %v256_v2, %v191_v36  ;;  %v635_v36 = vld [vmem:[%s1114_s6] ss:$0 sm:$0xff] }
  0xe7   :  { %v235_v5 = vpop.f32.mrf.mxu1 }
  0xe8   :  { %v236_v6 = vadd.f32 %v235_v5, %v170_v3  ;;  %v280_v7 = vadd.f32 %v939_v19, %v257_v4 }
  0xea   :  { %v273_v8 = vadd.f32 %v939_v19, %v236_v6  ;;  %v296_v9 = vmax.f32 %v280_v7, 0.0 }
  0xec   :  { %v289_v10 = vmax.f32 %v273_v8, 0.0  ;;  %376 = vmatmul.f32.gmra.mxu3 %v296_v9 }
  0xed   :  { %v259_v11 = vpop.f32.mrf.mxu3 }
  0xee   :  { %355 = vmatmul.f32.gmra.mxu2 %v289_v10  ;;  %v173_v12 = vpop.f32.mrf.mxu0  ;;  %v260_v13 = vadd.f32 %v259_v11, %v194_v42 }
  0xef   :  { %v238_v14 = vpop.f32.mrf.mxu1 }
  0xf0   :  { %v239_v15 = vadd.f32 %v238_v14, %v173_v12  ;;  %v281_v16 = vadd.f32 %v939_v19, %v260_v13 }
  0xf2   :  { %v274_v17 = vadd.f32 %v939_v19, %v239_v15  ;;  %v297_v18 = vmax.f32 %v281_v16, 0.0 }
  0xf4   :  { %v290_v20 = vmax.f32 %v274_v17, 0.0  ;;  %379 = vmatmul.f32.gmra.mxu3 %v297_v18 }
  0xf6   :  { %358 = vmatmul.f32.gmra.mxu2 %v290_v20  ;;  %v176_v21 = vpop.f32.mrf.mxu0 }
  0xf7   :  { %v241_v22 = vpop.f32.mrf.mxu1 }
  0xf8   :  { %v242_v23 = vadd.f32 %v241_v22, %v176_v21 }
  0xfa   :  { %v275_v24 = vadd.f32 %v939_v19, %v242_v23 }
  0xfc   :  { %v291_v25 = vmax.f32 %v275_v24, 0.0 }
  0xfe   :  { %361 = vmatmul.f32.gmra.mxu2 %v291_v25  ;;  %v179_v26 = vpop.f32.mrf.mxu0 }
  0xff   :  { %v244_v27 = vpop.f32.mrf.mxu1 }
 0x100   :  { %v245_v28 = vadd.f32 %v244_v27, %v179_v26 }
 0x102   :  { %v276_v29 = vadd.f32 %v939_v19, %v245_v28 }
 0x104   :  { %v292_v30 = vmax.f32 %v276_v29, 0.0 }
 0x106   :  { %364 = vmatmul.f32.gmra.mxu2 %v292_v30  ;;  %v182_v31 = vpop.f32.mrf.mxu0 }
 0x107   :  { %v247_v32 = vpop.f32.mrf.mxu1 }
 0x108   :  { %v248_v33 = vadd.f32 %v247_v32, %v182_v31 }
 0x10a   :  { %v277_v34 = vadd.f32 %v939_v19, %v248_v33 }
 0x10c   :  { %v293_v35 = vmax.f32 %v277_v34, 0.0 }
 0x10e   :  { %367 = vmatmul.f32.gmra.mxu2 %v293_v35 }
 0x139   :  { %v335_v37 = vpop.f32.mrf.mxu2 }
 0x13a   :  { %v336_v38 = vadd.f32 %v635_v36, %v335_v37 }
 0x13c   :  { %383 = vmax.xlane.f32.xlu0 %v336_v38 }
 0x141   :  { %v338_v39 = vpop.f32.mrf.mxu2 }
 0x142   :  { %v339_v40 = vadd.f32 %v635_v36, %v338_v39 }
 0x144   :  { %385 = vmax.xlane.f32.xlu0 %v339_v40 }
 0x149   :  { %v341_v41 = vpop.f32.mrf.mxu2 }
 0x14a   :  { %v342_v42 = vadd.f32 %v635_v36, %v341_v41 }
 0x14c   :  { %387 = vmax.xlane.f32.xlu1 %v342_v42 }
 0x151   :  { %v344_v43 = vpop.f32.mrf.mxu2 }
 0x152   :  { %v345_v44 = vadd.f32 %v635_v36, %v344_v43 }
 0x154   :  { %389 = vmax.xlane.f32.xlu1 %v345_v44 }
 0x159   :  { %v347_v45 = vpop.f32.mrf.mxu2 }
 0x15a   :  { %v348_v19 = vadd.f32 %v635_v36, %v347_v45 }
 0x15c   :  { %391 = vmax.xlane.f32.xlu2 %v348_v19 }
 0x15f   :  { %v371_v46 = vpop.f32.mrf.mxu3 }
 0x160   :  { %v372_v47 = vadd.f32 %v635_v36, %v371_v46 }
 0x161   :  { %v350_v48 = vpop.f32.mrf.mxu2 }
 0x162   :  { %v351_v49 = vadd.f32 %v635_v36, %v350_v48  ;;  %407 = vmax.xlane.f32.xlu0 %v372_v47 }
 0x164   :  { %393 = vmax.xlane.f32.xlu2 %v351_v49 }
 0x167   :  { %v374_v54 = vpop.f32.mrf.mxu3 }
 0x168   :  { %v978_v1 = vadd.f32 %v635_v36, %v374_v54 }
 0x169   :  { %v353_v50 = vpop.f32.mrf.mxu2 }
 0x16a   :  { %v960_v51 = vadd.f32 %v635_v36, %v353_v50 }
 0x16c   :  { %395 = vmax.xlane.f32.xlu0 %v960_v51 }
 0x16f   :  { %v377_v57 = vpop.f32.mrf.mxu3 }
 0x170   :  { %v984_v3 = vadd.f32 %v635_v36, %v377_v57 }
 0x171   :  { %v356_v52 = vpop.f32.mrf.mxu2 }
 0x172   :  { %v963_v53 = vadd.f32 %v635_v36, %v356_v52 }
 0x174   :  { %397 = vmax.xlane.f32.xlu1 %v963_v53 }
 0x177   :  { %v380_v60 = vpop.f32.mrf.mxu3 }
 0x178   :  { %v972_v62 = vadd.f32 %v635_v36, %v380_v60 }
 0x179   :  { %v359_v55 = vpop.f32.mrf.mxu2 }
 0x17a   :  { %v966_v56 = vadd.f32 %v635_v36, %v359_v55 }
 0x17c   :  { %399 = vmax.xlane.f32.xlu2 %v966_v56 }
 0x181   :  { %v362_v58 = vpop.f32.mrf.mxu2 }
 0x182   :  { %v969_v59 = vadd.f32 %v635_v36, %v362_v58 }
 0x184   :  { %401 = vmax.xlane.f32.xlu0 %v969_v59 }
 0x189   :  { %v365_v61 = vpop.f32.mrf.mxu2 }
 0x18a   :  { %v974_v63 = vadd.f32 %v635_v36, %v365_v61 }
 0x18c   :  { %403 = vmax.xlane.f32.xlu1 %v974_v63  ;;  %413 = vmax.xlane.f32.xlu0 %v972_v62 }
 0x191   :  { %v368_v0 = vpop.f32.mrf.mxu2 }
 0x192   :  { %v980_v2 = vadd.f32 %v635_v36, %v368_v0 }
 0x194   :  { %405 = vmax.xlane.f32.xlu2 %v980_v2  ;;  %409 = vmax.xlane.f32.xlu1 %v978_v1 }
 0x19c   :  { %411 = vmax.xlane.f32.xlu2 %v984_v3 }
 0x1af   :  { %v384_v4 = vpop.xlane.xlu0 %383 }
 0x1b0   :  { %v987_v5 = vsub.f32 %v336_v38, %v384_v4 }
 0x1b2   :  { %v431_v6 = vmul.f32 1.442695, %v987_v5 }
 0x1b4   :  { %636 = vpow2.f32 %v431_v6 }
 0x1b7   :  { %v386_v7 = vpop.xlane.xlu0 %385 }
 0x1b8   :  { %v990_v8 = vsub.f32 %v339_v40, %v386_v7 }
 0x1ba   :  { %v637_v9 = vpop.eup %636  ;;  %v433_v10 = vmul.f32 1.442695, %v990_v8 }
 0x1bb   :  { %463 = vadd.xlane.f32.xlu1 %v637_v9 }
 0x1bc   :  { %638 = vpow2.f32 %v433_v10 }
 0x1bf   :  { %v388_v11 = vpop.xlane.xlu1 %387 }
 0x1c0   :  { %v993_v12 = vsub.f32 %v342_v42, %v388_v11 }
 0x1c2   :  { %v639_v13 = vpop.eup %638  ;;  %v435_v14 = vmul.f32 1.442695, %v993_v12 }
 0x1c3   :  { %465 = vadd.xlane.f32.xlu2 %v639_v13 }
 0x1c4   :  { %640 = vpow2.f32 %v435_v14 }
 0x1c7   :  { %v390_v15 = vpop.xlane.xlu1 %389 }
 0x1c8   :  { %v996_v16 = vsub.f32 %v345_v44, %v390_v15 }
 0x1ca   :  { %v641_v17 = vpop.eup %640  ;;  %v437_v18 = vmul.f32 1.442695, %v996_v16 }
 0x1cb   :  { %467 = vadd.xlane.f32.xlu0 %v641_v17 }
 0x1cc   :  { %642 = vpow2.f32 %v437_v18 }
 0x1cf   :  { %v392_v20 = vpop.xlane.xlu2 %391 }
 0x1d0   :  { %v999_v21 = vsub.f32 %v348_v19, %v392_v20 }
 0x1d2   :  { %v643_v22 = vpop.eup %642  ;;  %v439_v23 = vmul.f32 1.442695, %v999_v21 }
 0x1d3   :  { %469 = vadd.xlane.f32.xlu1 %v643_v22 }
 0x1d4   :  { %644 = vpow2.f32 %v439_v23 }
 0x1d5   :  { %v408_v24 = vpop.xlane.xlu0 %407 }
 0x1d6   :  { %v1002_v25 = vsub.f32 %v372_v47, %v408_v24 }
 0x1d7   :  { %v394_v26 = vpop.xlane.xlu2 %393 }
 0x1d8   :  { %v455_v27 = vmul.f32 1.442695, %v1002_v25  ;;  %v1005_v28 = vsub.f32 %v351_v49, %v394_v26 }
 0x1da   :  { %v645_v29 = vpop.eup %644  ;;  %646 = vpow2.f32 %v455_v27  ;;  %v441_v30 = vmul.f32 1.442695, %v1005_v28 }
 0x1db   :  { %471 = vadd.xlane.f32.xlu2 %v645_v29 }
 0x1dc   :  { %648 = vpow2.f32 %v441_v30 }
 0x1df   :  { %v396_v31 = vpop.xlane.xlu0 %395 }
 0x1e0   :  { %v647_v32 = vpop.eup %646  ;;  %v1009_v33 = vsub.f32 %v960_v51, %v396_v31 }
 0x1e1   :  { %487 = vadd.xlane.f32.xlu1 %v647_v32 }
 0x1e2   :  { %v649_v34 = vpop.eup %648  ;;  %v443_v35 = vmul.f32 1.442695, %v1009_v33 }
 0x1e3   :  { %473 = vadd.xlane.f32.xlu0 %v649_v34 }
 0x1e4   :  { %650 = vpow2.f32 %v443_v35 }
 0x1e7   :  { %v398_v36 = vpop.xlane.xlu1 %397 }
 0x1e8   :  { %v1013_v37 = vsub.f32 %v963_v53, %v398_v36 }
 0x1ea   :  { %v651_v38 = vpop.eup %650  ;;  %v445_v39 = vmul.f32 1.442695, %v1013_v37 }
 0x1eb   :  { %475 = vadd.xlane.f32.xlu1 %v651_v38 }
 0x1ec   :  { %652 = vpow2.f32 %v445_v39 }
 0x1ef   :  { %v400_v40 = vpop.xlane.xlu2 %399 }
 0x1f0   :  { %v1017_v41 = vsub.f32 %v966_v56, %v400_v40 }
 0x1f2   :  { %v653_v42 = vpop.eup %652  ;;  %v447_v43 = vmul.f32 1.442695, %v1017_v41 }
 0x1f3   :  { %477 = vadd.xlane.f32.xlu2 %v653_v42 }
 0x1f4   :  { %654 = vpow2.f32 %v447_v43 }
 0x1f7   :  { %v402_v44 = vpop.xlane.xlu0 %401 }
 0x1f8   :  { %v1021_v45 = vsub.f32 %v969_v59, %v402_v44 }
 0x1fa   :  { %v655_v19 = vpop.eup %654  ;;  %v449_v46 = vmul.f32 1.442695, %v1021_v45 }
 0x1fb   :  { %479 = vadd.xlane.f32.xlu0 %v655_v19 }
 0x1fc   :  { %656 = vpow2.f32 %v449_v46 }
 0x1ff   :  { %v404_v47 = vpop.xlane.xlu1 %403  ;;  %v414_v48 = vpop.xlane.xlu0 %413 }
 0x200   :  { %v1025_v49 = vsub.f32 %v974_v63, %v404_v47  ;;  %v1028_v50 = vsub.f32 %v972_v62, %v414_v48 }
 0x202   :  { %v657_v51 = vpop.eup %656  ;;  %v451_v52 = vmul.f32 1.442695, %v1025_v49  ;;  %v461_v53 = vmul.f32 1.442695, %v1028_v50 }
 0x203   :  { %481 = vadd.xlane.f32.xlu1 %v657_v51 }
 0x204   :  { %658 = vpow2.f32 %v451_v52 }
 0x205   :  { %660 = vpow2.f32 %v461_v53 }
 0x207   :  { %v406_v54 = vpop.xlane.xlu2 %405  ;;  %v410_v55 = vpop.xlane.xlu1 %409 }
 0x208   :  { %v1033_v56 = vsub.f32 %v980_v2, %v406_v54  ;;  %v1036_v57 = vsub.f32 %v978_v1, %v410_v55 }
 0x20a   :  { %v659_v58 = vpop.eup %658  ;;  %v453_v59 = vmul.f32 1.442695, %v1033_v56  ;;  %v457_v60 = vmul.f32 1.442695, %v1036_v57 }
 0x20b   :  { %v661_v61 = vpop.eup %660  ;;  %483 = vadd.xlane.f32.xlu2 %v659_v58 }
 0x20c   :  { %662 = vpow2.f32 %v453_v59  ;;  %493 = vadd.xlane.f32.xlu1 %v661_v61 }
 0x20d   :  { %664 = vpow2.f32 %v457_v60 }
 0x20f   :  { %v412_v62 = vpop.xlane.xlu2 %411 }
 0x210   :  { %v1041_v63 = vsub.f32 %v984_v3, %v412_v62 }
 0x212   :  { %v663_v0 = vpop.eup %662  ;;  %v459_v2 = vmul.f32 1.442695, %v1041_v63 }
 0x213   :  { %v665_v4 = vpop.eup %664  ;;  %485 = vadd.xlane.f32.xlu0 %v663_v0 }
 0x214   :  { %666 = vpow2.f32 %v459_v2  ;;  %489 = vadd.xlane.f32.xlu2 %v665_v4 }
 0x21a   :  { %v667_v1 = vpop.eup %666 }
 0x21b   :  { %491 = vadd.xlane.f32.xlu0 %v667_v1 }
 0x22e   :  { %v464_v6 = vpop.xlane.xlu1 %463 }
 0x22f   :  { %668 = vlog2.f32 %v464_v6 }
 0x235   :  { %v669_v7 = vpop.eup %668 }
 0x236   :  { %v496_v9 = vmul.f32 0.6931472, %v669_v7  ;;  %v466_v10 = vpop.xlane.xlu2 %465 }
 0x237   :  { %670 = vlog2.f32 %v466_v10 }
 0x238   :  { %v527_v11 = vsub.f32 %v987_v5, %v496_v9 }
 0x23a   :  { %543 = vst [vmem:[%s1115_s7] sm:$0xff] %v527_v11 }
 0x23d   :  { %v671_v3 = vpop.eup %670 }
 0x23e   :  { %v498_v13 = vmul.f32 0.6931472, %v671_v3  ;;  %v468_v14 = vpop.xlane.xlu0 %467 }
 0x23f   :  { %672 = vlog2.f32 %v468_v14 }
 0x240   :  { %v528_v15 = vsub.f32 %v990_v8, %v498_v13 }
 0x242   :  { %544 = vst [vmem:[%s1115_s7 + $0x8] sm:$0xff] %v528_v15 }
 0x245   :  { %v673_v17 = vpop.eup %672 }
 0x246   :  { %v500_v18 = vmul.f32 0.6931472, %v673_v17  ;;  %v470_v20 = vpop.xlane.xlu1 %469 }
 0x247   :  { %674 = vlog2.f32 %v470_v20 }
 0x248   :  { %v529_v5 = vsub.f32 %v993_v12, %v500_v18 }
 0x24a   :  { %545 = vst [vmem:[%s1115_s7 + $0x10] sm:$0xff] %v529_v5 }
 0x24d   :  { %v675_v22 = vpop.eup %674 }
 0x24e   :  { %v502_v23 = vmul.f32 0.6931472, %v675_v22  ;;  %v472_v24 = vpop.xlane.xlu2 %471 }
 0x24f   :  { %676 = vlog2.f32 %v472_v24 }
 0x250   :  { %v530_v8 = vsub.f32 %v996_v16, %v502_v23 }
 0x252   :  { %546 = vst [vmem:[%s1115_s7 + $0x18] sm:$0xff] %v530_v8 }
 0x254   :  { %v488_v26 = vpop.xlane.xlu1 %487 }
 0x255   :  { %v677_v27 = vpop.eup %676  ;;  %678 = vlog2.f32 %v488_v26 }
 0x256   :  { %v504_v29 = vmul.f32 0.6931472, %v677_v27  ;;  %v474_v30 = vpop.xlane.xlu0 %473 }
 0x257   :  { %680 = vlog2.f32 %v474_v30 }
 0x258   :  { %v531_v12 = vsub.f32 %v999_v21, %v504_v29 }
 0x25a   :  { %547 = vst [vmem:[%s1115_s7 + $0x20] sm:$0xff] %v531_v12 }
 0x25b   :  { %v679_v31 = vpop.eup %678 }
 0x25c   :  { %v520_v32 = vmul.f32 0.6931472, %v679_v31 }
 0x25d   :  { %v681_v34 = vpop.eup %680 }
 0x25e   :  { %v539_v16 = vsub.f32 %v1002_v25, %v520_v32  ;;  %v506_v35 = vmul.f32 0.6931472, %v681_v34  ;;  %v476_v36 = vpop.xlane.xlu1 %475 }
 0x25f   :  { %682 = vlog2.f32 %v476_v36 }
 0x260   :  { %555 = vst [vmem:[%s1115_s7 + $0x60] sm:$0xff] %v539_v16  ;;  %v532_v38 = vsub.f32 %v1005_v28, %v506_v35 }
 0x262   :  { %548 = vst [vmem:[%s1115_s7 + $0x28] sm:$0xff] %v532_v38 }
 0x265   :  { %v683_v21 = vpop.eup %682 }
 0x266   :  { %v508_v39 = vmul.f32 0.6931472, %v683_v21  ;;  %v478_v40 = vpop.xlane.xlu2 %477 }
 0x267   :  { %684 = vlog2.f32 %v478_v40 }
 0x268   :  { %v533_v42 = vsub.f32 %v1009_v33, %v508_v39 }
 0x26a   :  { %549 = vst [vmem:[%s1115_s7 + $0x30] sm:$0xff] %v533_v42 }
 0x26d   :  { %v685_v25 = vpop.eup %684 }
 0x26e   :  { %v510_v43 = vmul.f32 0.6931472, %v685_v25  ;;  %v480_v44 = vpop.xlane.xlu0 %479 }
 0x26f   :  { %686 = vlog2.f32 %v480_v44 }
 0x270   :  { %v534_v28 = vsub.f32 %v1013_v37, %v510_v43 }
 0x272   :  { %550 = vst [vmem:[%s1115_s7 + $0x38] sm:$0xff] %v534_v28 }
 0x275   :  { %v687_v19 = vpop.eup %686 }
 0x276   :  { %v512_v46 = vmul.f32 0.6931472, %v687_v19  ;;  %v482_v47 = vpop.xlane.xlu1 %481 }
 0x277   :  { %688 = vlog2.f32 %v482_v47 }
 0x278   :  { %v535_v33 = vsub.f32 %v1017_v41, %v512_v46 }
 0x27a   :  { %551 = vst [vmem:[%s1115_s7 + $0x40] sm:$0xff] %v535_v33 }
 0x27d   :  { %v689_v48 = vpop.eup %688 }
 0x27e   :  { %v514_v51 = vmul.f32 0.6931472, %v689_v48  ;;  %v484_v52 = vpop.xlane.xlu2 %483 }
 0x27f   :  { %690 = vlog2.f32 %v484_v52  ;;  %v494_v53 = vpop.xlane.xlu1 %493 }
 0x280   :  { %v536_v37 = vsub.f32 %v1021_v45, %v514_v51  ;;  %692 = vlog2.f32 %v494_v53 }
 0x282   :  { %552 = vst [vmem:[%s1115_s7 + $0x48] sm:$0xff] %v536_v37 }
 0x285   :  { %v691_v54 = vpop.eup %690 }
 0x286   :  { %v693_v55 = vpop.eup %692  ;;  %v516_v58 = vmul.f32 0.6931472, %v691_v54  ;;  %v486_v41 = vpop.xlane.xlu0 %485 }
 0x287   :  { %v526_v59 = vmul.f32 0.6931472, %v693_v55  ;;  %v490_v60 = vpop.xlane.xlu2 %489  ;;  %694 = vlog2.f32 %v486_v41 }
 0x288   :  { %v537_v61 = vsub.f32 %v1025_v49, %v516_v58  ;;  %696 = vlog2.f32 %v490_v60 }
 0x289   :  { %v542_v62 = vsub.f32 %v1028_v50, %v526_v59 }
 0x28a   :  { %553 = vst [vmem:[%s1115_s7 + $0x50] sm:$0xff] %v537_v61 }
 0x28b   :  { %558 = vst [vmem:[%s1115_s7 + $0x78] sm:$0xff] %v542_v62 }
 0x28d   :  { %v695_v45 = vpop.eup %694 }
 0x28e   :  { %v697_v0 = vpop.eup %696  ;;  %v518_v2 = vmul.f32 0.6931472, %v695_v45  ;;  %v492_v4 = vpop.xlane.xlu0 %491 }
 0x28f   :  { %v522_v1 = vmul.f32 0.6931472, %v697_v0  ;;  %698 = vlog2.f32 %v492_v4 }
 0x290   :  { %v538_v6 = vsub.f32 %v1033_v56, %v518_v2 }
 0x291   :  { %v540_v49 = vsub.f32 %v1036_v57, %v522_v1 }
 0x292   :  { %554 = vst [vmem:[%s1115_s7 + $0x58] sm:$0xff] %v538_v6 }
 0x293   :  { %556 = vst [vmem:[%s1115_s7 + $0x68] sm:$0xff] %v540_v49 }
 0x295   :  { %v699_v50 = vpop.eup %698 }
 0x296   :  { %v524_v7 = vmul.f32 0.6931472, %v699_v50 }
 0x298   :  { %v541_v9 = vsub.f32 %v1041_v63, %v524_v7 }
 0x29a   :  { %557 = vst [vmem:[%s1115_s7 + $0x70] sm:$0xff] %v541_v9 }
 0x29b   :  { %563 = vsyncpa [#allocation7], 1 }

</bundles_post_ra>
